<compile_context>
chip_gen: v5e
topology: v5e:2x2
jax: 0.10.0
libtpu: 0.0.40
codegen_flags: <defaults>
</compile_context>

<pallas_src>
import functools

import jax
import jax.numpy as jnp
from jax.experimental import pallas as pl
from jax.experimental.pallas import tpu as pltpu

_IGNORE_INDEX = -100  # PyTorch F.cross_entropy default


def _ce_kernel(pred_ref, tgt_ref, out_ref, acc_ref, m_ref, l_ref, pk_ref,
               *, n_rows, n_classes, tile_n, tile_c, tiles_per_core):
    pc = pl.program_id(0)          # core-parallel slice of the row space
    ni = pl.program_id(1)          # row-tile index within this slice
    ci = pl.program_id(2)          # class-tile index (online logsumexp axis)
    n_ni = pl.num_programs(1)
    n_ci = pl.num_programs(2)

    # ---- init this slice's partial-sum accumulator -------------------------
    @pl.when(jnp.logical_and(ni == 0, ci == 0))
    def _():
        acc_ref[...] = jnp.zeros_like(acc_ref)

    # ---- init per-row online-logsumexp state at the first class tile -------
    @pl.when(ci == 0)
    def _():
        m_ref[...] = jnp.full_like(m_ref, -jnp.inf)
        l_ref[...] = jnp.zeros_like(l_ref)
        pk_ref[...] = jnp.zeros_like(pk_ref)

    x = pred_ref[...].astype(jnp.float32)                     # (tile_n, tile_c)
    t = tgt_ref[...]                                          # (tile_n, 1) i32

    # global class ids covered by this class tile
    col = jax.lax.broadcasted_iota(jnp.int32, x.shape, 1) + ci * tile_c
    if n_classes % tile_c != 0:
        # mask padded columns of the last partial class tile
        x = jnp.where(col < n_classes, x, -jnp.inf)

    # ---- online logsumexp update -------------------------------------------
    m_prev = m_ref[...]
    m_new = jnp.maximum(m_prev, jnp.max(x, axis=-1, keepdims=True))
    l_ref[...] = (jnp.exp(m_prev - m_new) * l_ref[...]
                  + jnp.sum(jnp.exp(x - m_new), axis=-1, keepdims=True))
    m_ref[...] = m_new

    # gather the target-class logit via a masked select (no dynamic gather)
    pk_ref[...] += jnp.sum(jnp.where(col == t, x, 0.0), axis=-1, keepdims=True)

    # ---- finalize this row tile at the last class tile ----------------------
    @pl.when(ci == n_ci - 1)
    def _():
        per_row = jnp.log(l_ref[...]) + m_ref[...] - pk_ref[...]   # NLL per row
        row = ((pc * tiles_per_core + ni) * tile_n
               + jax.lax.broadcasted_iota(jnp.int32, (tile_n, 1), 0))
        valid = jnp.logical_and(row < n_rows, t != _IGNORE_INDEX)
        acc_ref[...] += jnp.sum(jnp.where(valid, per_row, 0.0),
                                axis=0, keepdims=True)

    # ---- write this slice's partial sum once, at the very last step ---------
    @pl.when(jnp.logical_and(ni == n_ni - 1, ci == n_ci - 1))
    def _():
        out_ref[...] = jnp.broadcast_to(acc_ref[...], out_ref.shape)


def cross_entropy_loss(pred, target, num_classes):
    """pred: (..., num_classes); target: (...,) int — returns scalar f32."""
    pred2d = pred.reshape(-1, num_classes)          # keep native dtype (bf16 ok)
    tgt2d = target.reshape(-1, 1).astype(jnp.int32)
    n, c = pred2d.shape

    # --- tile sizing: sized to fit v7x's smaller VMEM with double-buffering ---
    max_tile_c = 2048                               # lanes, multiple of 128
    tile_c = c if c <= max_tile_c else max_tile_c
    c_tiles = pl.cdiv(c, tile_c)

    max_tile_n = 512                                # rows, multiple of 8
    tile_n = n if n < max_tile_n else max_tile_n
    n_tiles = pl.cdiv(n, tile_n)

    n_cores = 2                                     # v7x has 2 TCs; harmless on 1-TC chips
    tiles_per_core = pl.cdiv(n_tiles, n_cores)

    def pred_index(pc, ni, ci):
        gi = jnp.minimum(pc * tiles_per_core + ni, n_tiles - 1)  # clamp: no OOB DMA
        return (gi, ci)

    def tgt_index(pc, ni, ci):
        gi = jnp.minimum(pc * tiles_per_core + ni, n_tiles - 1)
        return (gi, 0)

    kernel = functools.partial(
        _ce_kernel, n_rows=n, n_classes=c, tile_n=tile_n, tile_c=tile_c,
        tiles_per_core=tiles_per_core)

    itemsize = int(jnp.dtype(pred2d.dtype).itemsize)
    cost = pl.CostEstimate(
        flops=int(6 * n * c),
        transcendentals=int(n * c + 2 * n),
        bytes_accessed=int(n * c * itemsize + n * 4 + n_cores * 8 * 128 * 4))

    out = pl.pallas_call(
        kernel,
        out_shape=jax.ShapeDtypeStruct((n_cores * 8, 128), jnp.float32),
        grid=(n_cores, tiles_per_core, c_tiles),
        in_specs=[
            pl.BlockSpec((tile_n, tile_c), pred_index),
            pl.BlockSpec((tile_n, 1), tgt_index),
        ],
        out_specs=pl.BlockSpec((8, 128), lambda pc, ni, ci: (pc, 0)),
        scratch_shapes=[
            pltpu.VMEM((1, 1), jnp.float32),        # partial-sum accumulator
            pltpu.VMEM((tile_n, 1), jnp.float32),   # running max m
            pltpu.VMEM((tile_n, 1), jnp.float32),   # running sum l
            pltpu.VMEM((tile_n, 1), jnp.float32),   # picked target logit
        ],
        compiler_params=pltpu.CompilerParams(
            dimension_semantics=("parallel", "arbitrary", "arbitrary")),
        cost_estimate=cost,
    )(pred2d, tgt2d)

    # per-core partial sums live at [p*8, 0]; final mean in the wrapper
    partials = out.reshape(n_cores, 8, 128)[:, 0, 0]
    denom = jnp.sum(tgt2d != _IGNORE_INDEX).astype(jnp.float32)  # PyTorch-style mean
    return jnp.sum(partials) / denom


if __name__ == "__main__":
    num_classes = 32
    batch, seq = 2, 8

    key = jax.random.PRNGKey(0)
    kp, kt = jax.random.split(key)
    pred = jax.random.normal(kp, (batch, seq, num_classes), dtype=jnp.float32)
    target = jax.random.randint(kt, (batch, seq), 0, num_classes, dtype=jnp.int32)

    loss = cross_entropy_loss(pred, target, num_classes)
    loss = jax.block_until_ready(loss)

    # pure-JAX reference check
    p2 = pred.reshape(-1, num_classes)
    t2 = target.reshape(-1)
    logp = jax.nn.log_softmax(p2, axis=-1)
    ref = -jnp.mean(logp[jnp.arange(p2.shape[0]), t2])
    assert jnp.allclose(loss, ref, atol=1e-5, rtol=1e-5), (loss, ref)

    print("KERNEL_OK")
</pallas_src>

<mosaic_0001>
module attributes {stable_mosaic.version = 11 : i64} {
  func.func @_ce_kernel(%arg0: i32, %arg1: i32, %arg2: i32, %arg3: memref<16x32xf32, #tpu.memory_space<vmem>>, %arg4: memref<16x1xi32, #tpu.memory_space<vmem>>, %arg5: memref<8x128xf32, #tpu.memory_space<vmem>>, %arg6: memref<1x1xf32, #tpu.memory_space<vmem>>, %arg7: memref<16x1xf32, #tpu.memory_space<vmem>>, %arg8: memref<16x1xf32, #tpu.memory_space<vmem>>, %arg9: memref<16x1xf32, #tpu.memory_space<vmem>>) attributes {dimension_semantics = [#tpu.dimension_semantics<parallel>, #tpu.dimension_semantics<arbitrary>, #tpu.dimension_semantics<arbitrary>], iteration_bounds = array<i64: 2, 1, 1>, scalar_prefetch = 0 : i64, scratch_operands = 4 : i64, tpu.core_type = #tpu.core_type<tc>, window_params = [{transform_indices = @transform_0, window_bounds = array<i64: 16, 32>}, {transform_indices = @transform_1, window_bounds = array<i64: 16, 1>}, {transform_indices = @transform_2, window_bounds = array<i64: 8, 128>}]} {
    %c0_i32 = arith.constant 0 : i32
    %0 = arith.cmpi eq, %arg1, %c0_i32 : i32
    %c0_i32_0 = arith.constant 0 : i32
    %1 = arith.cmpi eq, %arg2, %c0_i32_0 : i32
    %2 = arith.andi %0, %1 : i1
    %3 = arith.extui %2 : i1 to i32
    %c0_i32_1 = arith.constant 0 : i32
    %4 = arith.cmpi ne, %3, %c0_i32_1 : i32
    scf.if %4 {
      %cst_27 = arith.constant 0.000000e+00 : f32
      %47 = vector.broadcast %cst_27 : f32 to vector<1x1xf32>
      %c0_28 = arith.constant 0 : index
      %c0_29 = arith.constant 0 : index
      %48 = vector.load %arg6[%c0_28, %c0_29] : memref<1x1xf32, #tpu.memory_space<vmem>>, vector<1x1xf32>
      tpu.vector_store %arg6[%c0_28, %c0_29], %47 {strides = array<i32>} : memref<1x1xf32, #tpu.memory_space<vmem>>, vector<1x1xf32>,
    } else {
    }
    %c0_i32_2 = arith.constant 0 : i32
    %5 = arith.cmpi eq, %arg2, %c0_i32_2 : i32
    %6 = arith.extui %5 : i1 to i32
    %c0_i32_3 = arith.constant 0 : i32
    %7 = arith.cmpi ne, %6, %c0_i32_3 : i32
    scf.if %7 {
      %cst_27 = arith.constant 0xFF800000 : f32
      %47 = vector.broadcast %cst_27 : f32 to vector<16x1xf32>
      %c0_28 = arith.constant 0 : index
      %c0_29 = arith.constant 0 : index
      %48 = vector.load %arg7[%c0_28, %c0_29] : memref<16x1xf32, #tpu.memory_space<vmem>>, vector<16x1xf32>
      tpu.vector_store %arg7[%c0_28, %c0_29], %47 {strides = array<i32>} : memref<16x1xf32, #tpu.memory_space<vmem>>, vector<16x1xf32>,
      %cst_30 = arith.constant 0.000000e+00 : f32
      %49 = vector.broadcast %cst_30 : f32 to vector<16x1xf32>
      %c0_31 = arith.constant 0 : index
      %c0_32 = arith.constant 0 : index
      %50 = vector.load %arg8[%c0_31, %c0_32] : memref<16x1xf32, #tpu.memory_space<vmem>>, vector<16x1xf32>
      tpu.vector_store %arg8[%c0_31, %c0_32], %49 {strides = array<i32>} : memref<16x1xf32, #tpu.memory_space<vmem>>, vector<16x1xf32>,
      %cst_33 = arith.constant 0.000000e+00 : f32
      %51 = vector.broadcast %cst_33 : f32 to vector<16x1xf32>
      %c0_34 = arith.constant 0 : index
      %c0_35 = arith.constant 0 : index
      %52 = vector.load %arg9[%c0_34, %c0_35] : memref<16x1xf32, #tpu.memory_space<vmem>>, vector<16x1xf32>
      tpu.vector_store %arg9[%c0_34, %c0_35], %51 {strides = array<i32>} : memref<16x1xf32, #tpu.memory_space<vmem>>, vector<16x1xf32>,
    } else {
    }
    %c0 = arith.constant 0 : index
    %c0_4 = arith.constant 0 : index
    %8 = vector.load %arg3[%c0, %c0_4] : memref<16x32xf32, #tpu.memory_space<vmem>>, vector<16x32xf32>
    %c0_5 = arith.constant 0 : index
    %c0_6 = arith.constant 0 : index
    %9 = vector.load %arg4[%c0_5, %c0_6] : memref<16x1xi32, #tpu.memory_space<vmem>>, vector<16x1xi32>
    %10 = tpu.iota {dimensions = array<i32: 1>} : vector<16x32xi32>
    %c32_i32 = arith.constant 32 : i32
    %11 = arith.muli %arg2, %c32_i32 : i32
    %12 = vector.broadcast %11 : i32 to vector<16x32xi32>
    %13 = arith.addi %10, %12 : vector<16x32xi32>
    %c0_7 = arith.constant 0 : index
    %c0_8 = arith.constant 0 : index
    %14 = vector.load %arg7[%c0_7, %c0_8] : memref<16x1xf32, #tpu.memory_space<vmem>>, vector<16x1xf32>
    %cst = arith.constant dense<0xFF800000> : vector<16xf32>
    %15 = vector.multi_reduction <maximumf>, %8, %cst [1] : vector<16x32xf32> to vector<16xf32>
    %16 = vector.shape_cast %15 : vector<16xf32> to vector<16x1xf32>
    %17 = arith.maximumf %14, %16 : vector<16x1xf32>
    %18 = arith.subf %14, %17 : vector<16x1xf32>
    %19 = math.exp %18 : vector<16x1xf32>
    %c0_9 = arith.constant 0 : index
    %c0_10 = arith.constant 0 : index
    %20 = vector.load %arg8[%c0_9, %c0_10] : memref<16x1xf32, #tpu.memory_space<vmem>>, vector<16x1xf32>
    %21 = arith.mulf %19, %20 : vector<16x1xf32>
    %22 = vector.broadcast %17 : vector<16x1xf32> to vector<16x32xf32>
    %23 = arith.subf %8, %22 : vector<16x32xf32>
    %24 = math.exp %23 : vector<16x32xf32>
    %cst_11 = arith.constant dense<0.000000e+00> : vector<16xf32>
    %25 = vector.multi_reduction <add>, %24, %cst_11 [1] : vector<16x32xf32> to vector<16xf32>
    %26 = vector.shape_cast %25 : vector<16xf32> to vector<16x1xf32>
    %27 = arith.addf %21, %26 : vector<16x1xf32>
    %c0_12 = arith.constant 0 : index
    %c0_13 = arith.constant 0 : index
    %28 = vector.load %arg8[%c0_12, %c0_13] : memref<16x1xf32, #tpu.memory_space<vmem>>, vector<16x1xf32>
    tpu.vector_store %arg8[%c0_12, %c0_13], %27 {strides = array<i32>} : memref<16x1xf32, #tpu.memory_space<vmem>>, vector<16x1xf32>,
    %c0_14 = arith.constant 0 : index
    %c0_15 = arith.constant 0 : index
    %29 = vector.load %arg7[%c0_14, %c0_15] : memref<16x1xf32, #tpu.memory_space<vmem>>, vector<16x1xf32>
    tpu.vector_store %arg7[%c0_14, %c0_15], %17 {strides = array<i32>} : memref<16x1xf32, #tpu.memory_space<vmem>>, vector<16x1xf32>,
    %c0_16 = arith.constant 0 : index
    %c0_17 = arith.constant 0 : index
    %30 = vector.load %arg9[%c0_16, %c0_17] : memref<16x1xf32, #tpu.memory_space<vmem>>, vector<16x1xf32>
    %31 = vector.broadcast %9 : vector<16x1xi32> to vector<16x32xi32>
    %32 = arith.cmpi eq, %13, %31 : vector<16x32xi32>
    %cst_18 = arith.constant 0.000000e+00 : f32
    %33 = vector.broadcast %cst_18 : f32 to vector<16x32xf32>
    %34 = arith.select %32, %8, %33 : vector<16x32xi1>, vector<16x32xf32>
    %cst_19 = arith.constant dense<0.000000e+00> : vector<16xf32>
    %35 = vector.multi_reduction <add>, %34, %cst_19 [1] : vector<16x32xf32> to vector<16xf32>
    %36 = vector.shape_cast %35 : vector<16xf32> to vector<16x1xf32>
    %37 = arith.addf %30, %36 : vector<16x1xf32>
    %c0_20 = arith.constant 0 : index
    %c0_21 = arith.constant 0 : index
    %38 = vector.load %arg9[%c0_20, %c0_21] : memref<16x1xf32, #tpu.memory_space<vmem>>, vector<16x1xf32>
    tpu.vector_store %arg9[%c0_20, %c0_21], %37 {strides = array<i32>} : memref<16x1xf32, #tpu.memory_space<vmem>>, vector<16x1xf32>,
    %c0_i32_22 = arith.constant 0 : i32
    %39 = arith.cmpi eq, %arg2, %c0_i32_22 : i32
    %40 = arith.extui %39 : i1 to i32
    %c0_i32_23 = arith.constant 0 : i32
    %41 = arith.cmpi ne, %40, %c0_i32_23 : i32
    scf.if %41 {
      %c0_27 = arith.constant 0 : index
      %c0_28 = arith.constant 0 : index
      %47 = vector.load %arg8[%c0_27, %c0_28] : memref<16x1xf32, #tpu.memory_space<vmem>>, vector<16x1xf32>
      %48 = math.log %47 : vector<16x1xf32>
      %c0_29 = arith.constant 0 : index
      %c0_30 = arith.constant 0 : index
      %49 = vector.load %arg7[%c0_29, %c0_30] : memref<16x1xf32, #tpu.memory_space<vmem>>, vector<16x1xf32>
      %50 = arith.addf %48, %49 : vector<16x1xf32>
      %c0_31 = arith.constant 0 : index
      %c0_32 = arith.constant 0 : index
      %51 = vector.load %arg9[%c0_31, %c0_32] : memref<16x1xf32, #tpu.memory_space<vmem>>, vector<16x1xf32>
      %52 = arith.subf %50, %51 : vector<16x1xf32>
      %c1_i32 = arith.constant 1 : i32
      %53 = arith.muli %arg0, %c1_i32 : i32
      %54 = arith.addi %53, %arg1 : i32
      %c16_i32 = arith.constant 16 : i32
      %55 = arith.muli %54, %c16_i32 : i32
      %56 = tpu.iota {dimensions = array<i32: 0>} : vector<16x1xi32>
      %57 = vector.broadcast %55 : i32 to vector<16x1xi32>
      %58 = arith.addi %57, %56 : vector<16x1xi32>
      %c16_i32_33 = arith.constant 16 : i32
      %59 = vector.broadcast %c16_i32_33 : i32 to vector<16x1xi32>
      %60 = arith.cmpi slt, %58, %59 : vector<16x1xi32>
      %c-100_i32 = arith.constant -100 : i32
      %61 = vector.broadcast %c-100_i32 : i32 to vector<16x1xi32>
      %62 = arith.cmpi ne, %9, %61 : vector<16x1xi32>
      %63 = arith.andi %60, %62 : vector<16x1xi1>
      %c0_34 = arith.constant 0 : index
      %c0_35 = arith.constant 0 : index
      %64 = vector.load %arg6[%c0_34, %c0_35] : memref<1x1xf32, #tpu.memory_space<vmem>>, vector<1x1xf32>
      %cst_36 = arith.constant 0.000000e+00 : f32
      %65 = vector.broadcast %cst_36 : f32 to vector<16x1xf32>
      %66 = arith.select %63, %52, %65 : vector<16x1xi1>, vector<16x1xf32>
      %cst_37 = arith.constant dense<0.000000e+00> : vector<1xf32>
      %67 = vector.multi_reduction <add>, %66, %cst_37 [0] : vector<16x1xf32> to vector<1xf32>
      %68 = vector.shape_cast %67 : vector<1xf32> to vector<1x1xf32>
      %69 = arith.addf %64, %68 : vector<1x1xf32>
      %c0_38 = arith.constant 0 : index
      %c0_39 = arith.constant 0 : index
      %70 = vector.load %arg6[%c0_38, %c0_39] : memref<1x1xf32, #tpu.memory_space<vmem>>, vector<1x1xf32>
      tpu.vector_store %arg6[%c0_38, %c0_39], %69 {strides = array<i32>} : memref<1x1xf32, #tpu.memory_space<vmem>>, vector<1x1xf32>,
    } else {
    }
    %c0_i32_24 = arith.constant 0 : i32
    %42 = arith.cmpi eq, %arg1, %c0_i32_24 : i32
    %c0_i32_25 = arith.constant 0 : i32
    %43 = arith.cmpi eq, %arg2, %c0_i32_25 : i32
    %44 = arith.andi %42, %43 : i1
    %45 = arith.extui %44 : i1 to i32
    %c0_i32_26 = arith.constant 0 : i32
    %46 = arith.cmpi ne, %45, %c0_i32_26 : i32
    scf.if %46 {
      %c0_27 = arith.constant 0 : index
      %c0_28 = arith.constant 0 : index
      %47 = vector.load %arg6[%c0_27, %c0_28] : memref<1x1xf32, #tpu.memory_space<vmem>>, vector<1x1xf32>
      %48 = vector.shape_cast %47 : vector<1x1xf32> to vector<1x1xf32>
      %49 = vector.broadcast %48 : vector<1x1xf32> to vector<8x128xf32>
      %c0_29 = arith.constant 0 : index
      %c0_30 = arith.constant 0 : index
      %50 = vector.load %arg5[%c0_29, %c0_30] : memref<8x128xf32, #tpu.memory_space<vmem>>, vector<8x128xf32>
      tpu.vector_store %arg5[%c0_29, %c0_30], %49 {strides = array<i32>} : memref<8x128xf32, #tpu.memory_space<vmem>>, vector<8x128xf32>,
    } else {
    }
    return
  }
  func.func @transform_0(%arg0: i32, %arg1: i32, %arg2: i32) -> (i32, i32) {
    %c1_i32 = arith.constant 1 : i32
    %0 = arith.muli %arg0, %c1_i32 : i32
    %1 = arith.addi %0, %arg1 : i32
    %c0_i32 = arith.constant 0 : i32
    %2 = arith.minsi %1, %c0_i32 : i32
    %c0_i32_0 = arith.constant 0 : i32
    return %2, %arg2 : i32, i32
  }
  func.func @transform_1(%arg0: i32, %arg1: i32, %arg2: i32) -> (i32, i32) {
    %c1_i32 = arith.constant 1 : i32
    %0 = arith.muli %arg0, %c1_i32 : i32
    %1 = arith.addi %0, %arg1 : i32
    %c0_i32 = arith.constant 0 : i32
    %2 = arith.minsi %1, %c0_i32 : i32
    %c0_i32_0 = arith.constant 0 : i32
    %c0_i32_1 = arith.constant 0 : i32
    return %2, %c0_i32_0 : i32, i32
  }
  func.func @transform_2(%arg0: i32, %arg1: i32, %arg2: i32) -> (i32, i32) {
    %c0_i32 = arith.constant 0 : i32
    %c0_i32_0 = arith.constant 0 : i32
    return %arg0, %c0_i32 : i32, i32
  }
}

</mosaic_0001>

<bundles_post_ra>
// kernel: tpu_custom_call.1
= control target key start
LH: loop header
LB: loop body
LE: loop exit
PB: predicated region body
PF: predicated region fallthrough
CT: control target
= control target key end

     0   :  { %7 = vsyncpa [#allocation7], 0  ;;  %s812_s0 = inlined_call_operand.vmem [shape: f32[16,32], index: 0, kind: input, shape index: {}]   ;;  %s813_s1 = inlined_call_operand.vmem [shape: s32[16,1], index: 1, kind: input, shape index: {}]   ;;  %s814_s2 = inlined_call_operand.hbm [shape: f32[16,128], index: 2, kind: output, shape index: {}]  }
   0x1   :  { %9 = vsyncpa [#allocation7 + $0x1], 0  ;;  %s681_s9 = smov 0   ;;  %s683_s10 = smov 0  }
   0x2   :  { %s685_s11 = smov 0   ;;  %s687_s12 = smov 0  }
   0x3   :  { %s689_s13 = smov 0   ;;  %s691_s14 = smov 0  }
   0x4 LB: > { %s494_s15 = sadd.s32 4294967295, %s661_s14   ;;  %s495_s16 = sadd.s32 4294967294, %s661_s14   ;;  %s661_s14 = sphi %s691_s14, %s15_s14   ;;  %s657_s13 = sphi %s689_s13, %s821_s13   ;;  %s653_s12 = sphi %s687_s12, %s820_s12   ;;  %s649_s11 = sphi %s685_s11, %s819_s11   ;;  %s645_s10 = sphi %s683_s10, %s818_s10   ;;  %s641_s9 = sphi %s681_s9, %s817_s9  }
   0x5   : > { %s34_s17 = sadd.s32 1, %s657_s13  ;;  %s107_s18 = sadd.s32 1, %s649_s11 }
   0x6   : > { %p36_p0 = scmp.ge.s32.totalorder %s34_s17, 2  ;;  %p117_p1 = scmp.ne.s32.totalorder %s649_s11, %s645_s10 }
   0x7   : > { %p118_p2 = scmp.eq.s32.totalorder %s494_s15, 1  ;;  %p123_p3 = scmp.ne.s32.totalorder %s645_s10, %s641_s9 }
   0x8   : > { %s823_s17 = smov (%p36_p0, %s34_s17), 0  ;;  %p124_p5 = scmp.eq.s32.totalorder %s495_s16, 1 }
   0x9   : > { %p721_p4 = por %p118_p2, %p117_p1  ;;  %s104_s20 = ssub.s32 %s657_s13, %s823_s17 }
   0xa   : > { %p498_p6 = scmp.ge.s32.totalorder %s661_s14, 1  ;;  %p105_p7 = scmp.eq.s32.totalorder %s104_s20, 0 }
   0xb   : > { %p728_p8 = por %p124_p5, %p123_p3  ;;  %p175_p9 = scmp.lt.s32.totalorder %s661_s14, 3 }
   0xc   : > { %s734_s22 = scalar_select %p105_p7, %s649_s11, %s107_s18  }
   0xd   : > { %p176_p10 = pnand %p498_p6, %p175_p9 }
   0xe   : > { %p212_p11 = scmp.lt.s32.totalorder (!%p176_p10), %s653_s12, 0  ;;  %s504_s4 = sshll.u32 (!%p176_p10), %s653_s12, 4 }
   0xf   : > { %179 = sbr.rel (%p176_p10) target bundleno = 566 (0x236), region = 28  ;;  %s208_s5 = sand.u32 (!%p176_p10), 1, %s645_s10  }
  0x10   : > { %s499_s6 = sshll.u32 (!%p176_p10), %s208_s5, 3  ;;  %s506_s7 = sshll.u32 (!%p176_p10), %s653_s12, 3 }
  0x11   : > { %s404_s16 = scalar_lea.hbm (!%p176_p10), %s814_s2, %s506_s7  ;;  %s210_s18 = scalar_lea.vmem (!%p176_p10), [#allocation6], %s499_s6 }
  0x12   : > { %s406_s20 = sshll.u32 (!%p176_p10), %s210_s18, 4  ;;  %s407_s20 = int_to_ptr.vmem [resolvable:$true] %s406_s20 }
  0x14   : > { %vm249_vm0 = vcmask 7168   ;;  %v663_v0 = vmov -inf   ;;  %s213_s23 = scalar_select %p212_p11, %s653_s12, 0  ;;  %vm267_vm1 = vcmask 261120   ;;  %v664_v5 = vmov 0  }
  0x15   : > { %250 = vst.msk [vmem:[#allocation3] sm:$0xff] %vm249_vm0, %v663_v0  ;;  %567 = vset.pattern.permute.xlu1 %v664_v5  ;;  %568 = vset.pattern.permute.xlu2 %v664_v5  ;;  %v665_v6 = vmov 0.0   ;;  %v260_v17 = vlaneseq  ;;  %vm244_vm3 = vcmask 0   ;;  %v359_v56 = vstv %s504_s4 }
  0x16   : > { %251 = vst.msk [vmem:[#allocation3 + $0x8] sm:$0xff] %vm249_vm0, %v663_v0  ;;  %s500_s24 = sshll.u32 %s213_s23, 1  ;;  %569 = vset.pattern.permute.xlu0 %v664_v5  ;;  %s408_s23 = sshll.u32 %s404_s16, 4  ;;  %s409_s23 = int_to_ptr.hbm [resolvable:$true] %s408_s23 }
  0x17   : > { %p215_p12 = scmp.lt.s32.totalorder %s500_s24, 1  ;;  %252 = vst.msk [vmem:[#allocation4] sm:$0xff] %vm249_vm0, %v665_v6  ;;  %v261_v18 = vand.u32 127, %v260_v17  ;;  %v357_v54 = vshrl.u32 %v260_v17, 7 }
  0x18   : > { %253 = vst.msk [vmem:[#allocation4 + $0x8] sm:$0xff] %vm249_vm0, %v665_v6 }
  0x19   : > { %s825_s24 = smov (!%p215_p12, %s500_s24), 1  ;;  %254 = vst.msk [vmem:[#allocation5] sm:$0xff] %vm249_vm0, %v665_v6  ;;  %v358_v57 = vadd.s32 8, %v357_v54  ;;  %v360_v60 = vadd.s32 %v359_v56, %v357_v54 }
  0x1a   : > { %s501_s25 = sshll.u32 %s825_s24, 3  ;;  %255 = vst.msk [vmem:[#allocation5 + $0x8] sm:$0xff] %vm249_vm0, %v665_v6  ;;  %s394_s24 = scalar_lea.sflag [#allocation7], %s208_s5 }
  0x1b   : > { %s221_s28 = scalar_lea.vmem %s812_s0, %s501_s25  ;;  %s233_s3 = scalar_lea.vmem %s813_s1, %s501_s25  ;;  %245 = vst.msk [vmem:[#allocation2] sm:$0x1] %vm244_vm3, %v665_v6  ;;  %v361_v62 = vadd.s32 %v359_v56, %v358_v57  ;;  %vm362_vm5 = vcmp.lt.s32.totalorder %v360_v60, 16 }
  0x1c   : > { %v256_v1 = vld [vmem:[%s221_s28] sm:$0xff]  ;;  %v257_v3 = vld [vmem:[%s221_s28 + $0x8] sm:$0xff]  ;;  %s597_s25 = sshra.s32 %s409_s23, 4  ;;  %s603_s28 = scalar_lea.hbm %s814_s2, 16  ;;  %s598_s25 = int_to_ptr.hbm [resolvable:$true] %s597_s25 }
  0x1d   : > { %v268_v2 = vsel %vm267_vm1, %v256_v1, -inf  ;;  %v271_v4 = vsel %vm267_vm1, %v257_v3, -inf  ;;  %v752_v7 = vld [vmem:[%s233_s3] sm:$0xff]  ;;  %v755_v8 = vld [vmem:[%s233_s3 + $0x8] sm:$0xff]  ;;  %vm363_vm7 = vcmp.lt.s32.totalorder %v361_v62, 16  ;;  %s599_s26 = scalar_lea.hbm %s598_s25, 8  ;;  %p604_p2 = scmp.lt.s32.totalorder %s598_s25, %s814_s2 }
  0x1e   : > { %269 = vmax.xlane.f32.xlu0 %v268_v2  ;;  %318 = vperm.xlu2 %568, %v752_v7   ;;  %v265_v9 = vld [vmem:[#allocation3] sm:$0xff]  ;;  %v266_v13 = vld [vmem:[#allocation3 + $0x8] sm:$0xff]  ;;  %v282_v41 = vld [vmem:[#allocation4] sm:$0xff]  ;;  %vm364_vm6 = vcmp.ne.s32.totalorder %v752_v7, 4294967196  ;;  %vm365_vm8 = vcmp.ne.s32.totalorder %v755_v8, 4294967196  ;;  %p600_p13 = scmp.ne.s32.totalorder %s598_s25, %s599_s26  ;;  %p605_p3 = scmp.lt.s32.totalorder %s603_s28, %s599_s26 }
  0x1f   : > { %v283_v46 = vld [vmem:[#allocation4 + $0x8] sm:$0xff]  ;;  %vm366_vm9 = vmand %vm362_vm5, %vm364_vm6 }
  0x20   : > { %v315_v35 = vld [vmem:[#allocation5] sm:$0xff]  ;;  %vm367_vm10 = vmand %vm363_vm7, %vm365_vm8  ;;  %p601_p0 = pnand %p600_p13, %p721_p4  ;;  %p606_p5 = por %p605_p3, %p604_p2 }
  0x21   : > { %v316_v47 = vld [vmem:[#allocation5 + $0x8] sm:$0xff] }
  0x22   : > { %p602_p1 = pneg %p601_p0 }
  0x24   : > { %p607_p6 = pnand %p606_p5, %p602_p1 }
  0x26   : > { %272 = vmax.xlane.f32.xlu0 %v271_v4  ;;  %321 = vperm.xlu2 %568, %v755_v8  }
  0x78   : > { %v319_v19 = vpop.permute.xlu2 %318 }
  0x79   : > { %vm323_vm2 = vcmp.eq.s32.totalorder %v261_v18, %v319_v19 }
  0x7a   : > { %v325_v20 = vsel %vm323_vm2, %v256_v1, 0.0 }
  0x7b   : > { %v327_v21 = vsel %vm267_vm1, %v325_v20, 0.0 }
  0x7c   : > { %328 = vadd.xlane.f32.xlu2 %v327_v21 }
  0x80   : > { %v322_v27 = vpop.permute.xlu2 %321 }
  0x81   : > { %vm324_vm4 = vcmp.eq.s32.totalorder %v261_v18, %v322_v27  ;;  %v368_v18 = vld [vmem:[#allocation2] sm:$0x1] }
  0x82   : > { %v326_v31 = vsel %vm324_vm4, %v257_v3, 0.0 }
  0x83   : > { %v330_v32 = vsel %vm267_vm1, %v326_v31, 0.0 }
  0x91   : > { %v270_v10 = vpop.xlane.xlu0 %269 }
  0x92   : > { %v274_v11 = vmax.f32 %v265_v9, %v270_v10 }
  0x94   : > { %v276_v12 = vsub.f32 %v265_v9, %v274_v11  ;;  %313 = vst.msk [vmem:[#allocation3] sm:$0xff] %vm249_vm0, %v274_v11  ;;  %288 = vperm.xlu1 %567, %v274_v11  }
  0x96   : > { %v278_v38 = vmul.f32 1.442695, %v276_v12 }
  0x99   : > { %v273_v14 = vpop.xlane.xlu0 %272 }
  0x9a   : > { %v275_v15 = vmax.f32 %v266_v13, %v273_v14 }
  0x9b   : > { %v346_v61 = vld [vmem:[#allocation3] sm:$0xff] }
  0x9c   : > { %v277_v16 = vsub.f32 %v266_v13, %v275_v15  ;;  %314 = vst.msk [vmem:[#allocation3 + $0x8] sm:$0xff] %vm249_vm0, %v275_v15  ;;  %293 = vperm.xlu1 %567, %v275_v15  }
  0x9e   : > { %v280_v39 = vmul.f32 1.442695, %v277_v16 }
  0xa3   : > { %v347_v4 = vld [vmem:[#allocation3 + $0x8] sm:$0xff] }
  0xef   : > { %v329_v36 = vpop.xlane.xlu2 %328 }
  0xf0   : > { %v333_v37 = vadd.f32 %v329_v36, %v315_v35 }
  0xf2   : > { %335 = vst.msk [vmem:[#allocation5] sm:$0xff] %vm249_vm0, %v333_v37 }
  0xf9   : > { %v350_v0 = vld [vmem:[#allocation5] sm:$0xff] }
 0x106   : > { %v289_v22 = vpop.permute.xlu1 %288 }
 0x107   : > { %v296_v23 = vsub.f32 %v256_v1, %v289_v22 }
 0x109   : > { %v298_v24 = vmul.f32 1.442695, %v296_v23 }
 0x10b   : > { %571 = vpow2.f32 %v298_v24 }
 0x10e   : > { %v294_v25 = vpop.permute.xlu1 %293 }
 0x10f   : > { %v297_v26 = vsub.f32 %v257_v3, %v294_v25 }
 0x111   : > { %v572_v28 = vpop.eup %571  ;;  %v300_v29 = vmul.f32 1.442695, %v297_v26 }
 0x112   : > { %v302_v30 = vsel %vm267_vm1, %v572_v28, 0.0 }
 0x113   : > { %573 = vpow2.f32 %v300_v29  ;;  %303 = vadd.xlane.f32.xlu0 %v302_v30 }
 0x114   : > { %575 = vpow2.f32 %v278_v38 }
 0x115   : > { %577 = vpow2.f32 %v280_v39 }
 0x119   : > { %v574_v33 = vpop.eup %573 }
 0x11a   : > { %v305_v34 = vsel %vm267_vm1, %v574_v33, 0.0  ;;  %v576_v40 = vpop.eup %575 }
 0x11b   : > { %306 = vadd.xlane.f32.xlu1 %v305_v34  ;;  %331 = vadd.xlane.f32.xlu0 %v330_v32  ;;  %v284_v42 = vmul.f32 %v576_v40, %v282_v41  ;;  %v578_v45 = vpop.eup %577 }
 0x11c   : > { %v285_v48 = vmul.f32 %v578_v45, %v283_v46 }
 0x186   : > { %v304_v43 = vpop.xlane.xlu0 %303 }
 0x187   : > { %v308_v44 = vadd.f32 %v304_v43, %v284_v42 }
 0x189   : > { %311 = vst.msk [vmem:[#allocation4] sm:$0xff] %vm249_vm0, %v308_v44 }
 0x18e   : > { %v307_v49 = vpop.xlane.xlu1 %306  ;;  %v332_v50 = vpop.xlane.xlu0 %331 }
 0x18f   : > { %v309_v51 = vadd.f32 %v307_v49, %v285_v48  ;;  %v334_v52 = vadd.f32 %v332_v50, %v316_v47 }
 0x190   : > { %v340_v53 = vld [vmem:[#allocation4] sm:$0xff] }
 0x191   : > { %579 = vlog2.f32 %v340_v53  ;;  %312 = vst.msk [vmem:[#allocation4 + $0x8] sm:$0xff] %vm249_vm0, %v309_v51 }
 0x192   : > { %336 = vst.msk [vmem:[#allocation5 + $0x8] sm:$0xff] %vm249_vm0, %v334_v52 }
 0x197   : > { %v580_v55 = vpop.eup %579 }
 0x198   : > { %v343_v58 = vmul.f32 0.6931472, %v580_v55  ;;  %v341_v59 = vld [vmem:[#allocation4 + $0x8] sm:$0xff] }
 0x199   : > { %581 = vlog2.f32 %v341_v59  ;;  %v351_v6 = vld [vmem:[#allocation5 + $0x8] sm:$0xff] }
 0x19a   : > { %v348_v63 = vadd.f32 %v346_v61, %v343_v58 }
 0x19c   : > { %v352_v3 = vsub.f32 %v348_v63, %v350_v0 }
 0x19e   : > { %v369_v9 = vsel %vm366_vm9, %v352_v3, 0.0 }
 0x19f   : > { %v582_v1 = vpop.eup %581  ;;  %v371_v12 = vsel %vm249_vm0, %v369_v9, 0.0 }
 0x1a0   : > { %v345_v2 = vmul.f32 0.6931472, %v582_v1 }
 0x1a2   : > { %v349_v5 = vadd.f32 %v347_v4, %v345_v2 }
 0x1a4   : > { %v353_v10 = vsub.f32 %v349_v5, %v351_v6 }
 0x1a6   : > { %v370_v11 = vsel %vm367_vm10, %v353_v10, 0.0 }
 0x1a7   : > { %v372_v7 = vsel %vm249_vm0, %v370_v11, 0.0 }
 0x1a8   : > { %v373_v13 = vadd.f32 %v372_v7, %v371_v12 }
 0x1aa   : > { %v374_v14 = vrot.slane %v373_v13, 4 }
 0x1ac   : > { %v375_v15 = vadd.f32 %v374_v14, %v373_v13 }
 0x1ae   : > { %v376_v8 = vrot.slane %v375_v15, 2 }
 0x1b0   : > { %v377_v16 = vadd.f32 %v376_v8, %v375_v15 }
 0x1b2   : > { %v378_v17 = vrot.slane %v377_v16, 1 }
 0x1b4   : > { %v379_v19 = vadd.f32 %v378_v17, %v377_v16 }
 0x1b6   : > { %v380_v20 = vadd.f32 %v379_v19, %v368_v18 }
 0x1b8   : > { %382 = vst.msk [vmem:[#allocation2] sm:$0x1] %vm244_vm3, %v380_v20 }
 0x1bf   : > { %v570_v21 = vld [vmem:[#allocation2] ss:$0 sm:$0xff] }
 0x1c0   : > { %389 = vperm.xlu0 %569, %v570_v21  }
 0x232   : > { %v390_v22 = vpop.permute.xlu0 %389 }
 0x233   : > { %392 = vst [vmem:[%s210_s18] sm:$0xff] %v390_v22 }
 0x234   : > { %610 = shalt.err (!%p607_p6)
}
 0x235   : > { %509 = dma.vmem_to_hbm [thread:$0]  (%p721_p4), %s407_s20, 128, %s409_s23, %s394_s24  }
 0x236 PF: > { %p515_p7 = scmp.ge.s32.totalorder %s661_s14, 2  ;;  %s420_s3 = sand.u32 1, %s641_s9  }
 0x237   : > { %s421_s4 = scalar_lea.sflag [#allocation7], %s420_s3 }
 0x238   : > { %p512_p9 = pnand %p515_p7, %p728_p8 }
 0x23a   : > { %p513_p10 = pneg %p512_p9 }
 0x23c   : > { %636 = dma.done.wait (%p513_p10), %s421_s4, 128  }
 0x23d   : > { %638 = vsyncadd (%p513_p10), %s421_s4, 4294967168  ;;  %s15_s14 = sadd.s32 1, %s661_s14   ;;  %s817_s9 = smov %s645_s10 }
 0x23e   : > { %p12_p11 = scmp.ge.s32.totalorder %s15_s14, 4   ;;  %s818_s10 = smov %s649_s11 }
 0x23f   : > { %s819_s11 = smov %s734_s22  ;;  %s820_s12 = smov %s657_s13 }
 0x240   : > { %s821_s13 = smov %s823_s17  ;;  %14 = sbr.rel (!%p12_p11) target bundleno = 4 (0x4), region = 82 }
 0x245   :  { %427 = vsyncpa [#allocation7], 1 }
 0x246   :  { %429 = vsyncpa [#allocation7 + $0x1], 1 }

</bundles_post_ra>
